<compile_context>
chip_gen: v6e
topology: v6e:2x2x1
jax: 0.10.0
libtpu: 0.0.40
codegen_flags: <defaults>
</compile_context>

<pallas_src>
import functools

import jax
import jax.numpy as jnp
from jax.experimental import pallas as pl
from jax.experimental.pallas import tpu as pltpu


# -------------------- Pallas kernel --------------------


def convnet1d_fused_kernel(x_ref, wc_ref, bc_ref, w1_ref, b1_ref, w2_ref,
                           b2_ref, o_ref):
    """Fused conv1d (banded matmul) + ReLU + MaxPool(2) + fc1 + ReLU + fc2.

    x_ref : (TB, L*C)        flattened input rows (matmul dtype)
    wc_ref: (L*C, 2*POp)     [even | odd] banded conv weights (matmul dtype)
    bc_ref: (1, POp)         conv bias tiled over pool positions (f32)
    w1_ref: (POp, H)         fc1 weight, rows permuted + zero-padded (matmul dtype)
    b1_ref: (1, H)           fc1 bias (f32)
    w2_ref: (H, NCp)         fc2 weight, cols zero-padded to 128 (matmul dtype)
    b2_ref: (1, NCp)         fc2 bias, zero-padded (f32)
    o_ref : (TB, NCp)        logits (f32); valid columns are [:num_classes]
    """
    half = bc_ref.shape[1]

    # Conv at all (even|odd) pooled positions in ONE MXU dot, f32 accumulation.
    yc = jnp.dot(x_ref[...], wc_ref[...], preferred_element_type=jnp.float32)
    bias = bc_ref[...]
    y_even = yc[:, :half] + bias        # 128-aligned lane halves
    y_odd = yc[:, half:] + bias
    # ReLU then max == max then ReLU (ReLU is monotone); stays in VMEM/vregs.
    pooled = jnp.maximum(jnp.maximum(y_even, 0.0), jnp.maximum(y_odd, 0.0))

    h = jnp.dot(pooled.astype(w1_ref.dtype), w1_ref[...],
                preferred_element_type=jnp.float32)
    h = jnp.maximum(h + b1_ref[...], 0.0)

    out = jnp.dot(h.astype(w2_ref.dtype), w2_ref[...],
                  preferred_element_type=jnp.float32)
    o_ref[...] = (out + b2_ref[...]).astype(o_ref.dtype)


# -------------------- wrapper --------------------


def _round_up(n, m):
    return ((n + m - 1) // m) * m


def _banded_conv_weight(conv_w, L, start, po_pad):
    """Banded matrix W (L*C, po_pad) with
    W[(2p+start+k)*C + c, p*O + o] = conv_w[o, c, k]; extra columns are zero."""
    O, C, K = conv_w.shape
    L_out = L - K + 1
    P = L_out // 2
    pp = jnp.arange(P)
    kk = jnp.arange(K)
    cc = jnp.arange(C)
    oo = jnp.arange(O)
    t = 2 * pp + start                                               # (P,)
    rows = (t[:, None, None] + kk[None, :, None]) * C + cc[None, None, :]
    rows = jnp.broadcast_to(rows[..., None], (P, K, C, O)).reshape(-1)
    cols = pp[:, None, None, None] * O + oo[None, None, None, :]
    cols = jnp.broadcast_to(cols, (P, K, C, O)).reshape(-1)
    vals = jnp.broadcast_to(jnp.transpose(conv_w, (2, 1, 0))[None],
                            (P, K, C, O)).reshape(-1)
    w = jnp.zeros((L * C, po_pad), jnp.float32)
    return w.at[rows, cols].set(vals)


def pick_matmul_dtype():
    """bf16 MXU operands on v6e/v7x (f32 accumulation); f32 elsewhere (v5e)."""
    try:
        kind = jax.devices()[0].device_kind.lower()
    except Exception:
        return jnp.float32
    if "v6" in kind or "v7" in kind:
        return jnp.bfloat16
    return jnp.float32


@functools.partial(jax.jit, static_argnames=("mm_dtype",))
def convnet1d_forward(x, params, *, mm_dtype=jnp.float32):
    conv_w, conv_b, fc1_w, fc1_b, fc2_w, fc2_b = params
    x = x.astype(jnp.float32)
    B, L, C = x.shape
    O, _, K = conv_w.shape          # (64, 3, 3)
    H = fc1_w.shape[1]              # 128
    NC = fc2_w.shape[1]             # num_classes

    L_out = L - K + 1
    P = L_out // 2                  # MaxPool1d(2) output length
    PO = P * O
    PO_pad = _round_up(PO, 128)     # lane-dense pooled width
    NCp = _round_up(NC, 128)        # lane-dense logits width

    # ---- trace-time weight preparation (no activation-side im2col) ----
    w_even = _banded_conv_weight(conv_w, L, 0, PO_pad)
    w_odd = _banded_conv_weight(conv_w, L, 1, PO_pad)
    w_cat = jnp.concatenate([w_even, w_odd], axis=1).astype(mm_dtype)  # (L*C, 2*PO_pad)
    b_conv = jnp.pad(jnp.tile(conv_b.astype(jnp.float32), P),
                     (0, PO_pad - PO)).reshape(1, PO_pad)

    # Fold PyTorch's flatten order (feature = o*P + p) into fc1's rows so the
    # pooled layout (feature = p*O + o) is consumed directly (no transpose).
    src = (jnp.arange(O)[None, :] * P + jnp.arange(P)[:, None]).reshape(PO)
    w1 = jnp.pad(fc1_w[src], ((0, PO_pad - PO), (0, 0))).astype(mm_dtype)
    b1 = fc1_b.astype(jnp.float32).reshape(1, H)

    w2 = jnp.pad(fc2_w, ((0, 0), (0, NCp - NC))).astype(mm_dtype)      # (H, NCp)
    b2 = jnp.pad(fc2_b.astype(jnp.float32), (0, NCp - NC)).reshape(1, NCp)

    # ---- batch-row tiling: weights resident, rows software-pipelined ----
    ROW_BLOCK = 1024                # ~0.8 MiB/step VMEM; fewer grid-step overheads
    if B <= ROW_BLOCK:
        Bp = _round_up(B, 8)        # sublane-dense block, unmasked stores
        TB = Bp
    else:
        TB = ROW_BLOCK
        Bp = _round_up(B, TB)

    x_flat = x.reshape(B, L * C).astype(mm_dtype)   # free contiguous reshape
    if Bp != B:
        x_flat = jnp.pad(x_flat, ((0, Bp - B), (0, 0)))

    grid = (Bp // TB,)
    resident = lambda i: (0, 0)

    out_padded = pl.pallas_call(
        convnet1d_fused_kernel,
        out_shape=jax.ShapeDtypeStruct((Bp, NCp), jnp.float32),
        grid=grid,
        in_specs=[
            pl.BlockSpec((TB, L * C), lambda i: (i, 0)),
            pl.BlockSpec((L * C, 2 * PO_pad), resident),
            pl.BlockSpec((1, PO_pad), resident),
            pl.BlockSpec((PO_pad, H), resident),
            pl.BlockSpec((1, H), resident),
            pl.BlockSpec((H, NCp), resident),
            pl.BlockSpec((1, NCp), resident),
        ],
        out_specs=pl.BlockSpec((TB, NCp), lambda i: (i, 0)),
        compiler_params=pltpu.CompilerParams(
            dimension_semantics=("parallel",)),   # v7x: split rows across TCs
    )(x_flat, w_cat, b_conv, w1, b1, w2, b2)

    return out_padded[:B, :NC]


# -------------------- deterministic parameter init --------------------


def init_params(key, input_size, num_classes):
    C, O, K = 3, 64, 3
    flat = O * ((input_size - K + 1) // 2)
    k1, k2, k3, k4, k5, k6 = jax.random.split(key, 6)
    conv_w = jax.random.normal(k1, (O, C, K), jnp.float32) * 0.10
    conv_b = jax.random.normal(k2, (O,), jnp.float32) * 0.10
    fc1_w = jax.random.normal(k3, (flat, 128), jnp.float32) * 0.05
    fc1_b = jax.random.normal(k4, (128,), jnp.float32) * 0.05
    fc2_w = jax.random.normal(k5, (128, num_classes), jnp.float32) * 0.05
    fc2_b = jax.random.normal(k6, (num_classes,), jnp.float32) * 0.05
    return (conv_w, conv_b, fc1_w, fc1_b, fc2_w, fc2_b)


# -------------------- pure-JAX reference (mirrors PyTorch exactly) --------------------


def ref_forward(x, params):
    conv_w, conv_b, fc1_w, fc1_b, fc2_w, fc2_b = params
    x = jnp.transpose(x.astype(jnp.float32), (0, 2, 1))  # (B, C, L)
    B, C, L = x.shape
    O, _, K = conv_w.shape
    L_out = L - K + 1
    y = sum(
        jnp.einsum("bcl,oc->bol", x[:, :, k:k + L_out], conv_w[:, :, k])
        for k in range(K)
    )
    y = jnp.maximum(y + conv_b[None, :, None], 0.0)       # (B, O, L_out)
    P = L_out // 2
    y = jnp.max(y[:, :, : 2 * P].reshape(B, O, P, 2), axis=-1)  # (B, O, P)
    f = y.reshape(B, O * P)
    h = jnp.maximum(f @ fc1_w + fc1_b, 0.0)
    return h @ fc2_w + fc2_b


# -------------------- main --------------------

if __name__ == "__main__":
    input_size = 16      # sequence length L
    num_classes = 10
    batch = 2

    key = jax.random.PRNGKey(0)
    kx, kp = jax.random.split(key)
    x = jax.random.normal(kx, (batch, input_size, 3), jnp.float32)  # (B, L, C)
    params = init_params(kp, input_size, num_classes)

    mm_dtype = pick_matmul_dtype()
    out = jax.block_until_ready(convnet1d_forward(x, params, mm_dtype=mm_dtype))
    ref = jax.block_until_ready(ref_forward(x, params))

    assert out.shape == (batch, num_classes), out.shape
    tol = 6e-2 if mm_dtype == jnp.bfloat16 else 2e-2
    err = float(jnp.max(jnp.abs(out - ref)))
    assert jnp.allclose(out, ref, atol=tol, rtol=tol), (
        "mismatch vs reference: " + str(err)
    )
    print("KERNEL_OK")
</pallas_src>

<mosaic_0001>
module attributes {stable_mosaic.version = 11 : i64} {
  func.func @convnet1d_fused_kernel(%arg0: i32, %arg1: memref<8x48xf32, #tpu.memory_space<vmem>>, %arg2: memref<48x1024xf32, #tpu.memory_space<vmem>>, %arg3: memref<1x512xf32, #tpu.memory_space<vmem>>, %arg4: memref<512x128xf32, #tpu.memory_space<vmem>>, %arg5: memref<1x128xf32, #tpu.memory_space<vmem>>, %arg6: memref<128x128xf32, #tpu.memory_space<vmem>>, %arg7: memref<1x128xf32, #tpu.memory_space<vmem>>, %arg8: memref<8x128xf32, #tpu.memory_space<vmem>>) attributes {dimension_semantics = [#tpu.dimension_semantics<parallel>], iteration_bounds = array<i64: 1>, scalar_prefetch = 0 : i64, scratch_operands = 0 : i64, tpu.core_type = #tpu.core_type<tc>, window_params = [{transform_indices = @transform_0, window_bounds = array<i64: 8, 48>}, {pipeline_mode = #tpu.pipeline_mode<synchronous>, transform_indices = @transform_1, window_bounds = array<i64: 48, 1024>}, {pipeline_mode = #tpu.pipeline_mode<synchronous>, transform_indices = @transform_2, window_bounds = array<i64: 1, 512>}, {pipeline_mode = #tpu.pipeline_mode<synchronous>, transform_indices = @transform_3, window_bounds = array<i64: 512, 128>}, {pipeline_mode = #tpu.pipeline_mode<synchronous>, transform_indices = @transform_4, window_bounds = array<i64: 1, 128>}, {pipeline_mode = #tpu.pipeline_mode<synchronous>, transform_indices = @transform_5, window_bounds = array<i64: 128, 128>}, {pipeline_mode = #tpu.pipeline_mode<synchronous>, transform_indices = @transform_6, window_bounds = array<i64: 1, 128>}, {transform_indices = @transform_7, window_bounds = array<i64: 8, 128>}]} {
    %c0 = arith.constant 0 : index
    %c0_0 = arith.constant 0 : index
    %0 = vector.load %arg1[%c0, %c0_0] : memref<8x48xf32, #tpu.memory_space<vmem>>, vector<8x48xf32>
    %c0_1 = arith.constant 0 : index
    %c0_2 = arith.constant 0 : index
    %1 = vector.load %arg2[%c0_1, %c0_2] : memref<48x1024xf32, #tpu.memory_space<vmem>>, vector<48x1024xf32>
    %cst = arith.constant dense<0.000000e+00> : vector<8x1024xf32>
    %2 = tpu.matmul %0, %1, %cst {dimension_numbers = #tpu.dot_dimension_numbers<[1], [0], [0], [1], [0, 0, 1, 1], [], []>} : vector<8x48xf32>, vector<48x1024xf32>, vector<8x1024xf32> -> vector<8x1024xf32>
    %c0_3 = arith.constant 0 : index
    %c0_4 = arith.constant 0 : index
    %3 = vector.load %arg3[%c0_3, %c0_4] : memref<1x512xf32, #tpu.memory_space<vmem>>, vector<1x512xf32>
    %4 = vector.extract_strided_slice %2 {offsets = [0, 0], sizes = [8, 512], strides = [1, 1]} : vector<8x1024xf32> to vector<8x512xf32>
    %5 = vector.broadcast %3 : vector<1x512xf32> to vector<8x512xf32>
    %6 = arith.addf %4, %5 : vector<8x512xf32>
    %7 = vector.extract_strided_slice %2 {offsets = [0, 512], sizes = [8, 512], strides = [1, 1]} : vector<8x1024xf32> to vector<8x512xf32>
    %8 = vector.broadcast %3 : vector<1x512xf32> to vector<8x512xf32>
    %9 = arith.addf %7, %8 : vector<8x512xf32>
    %cst_5 = arith.constant 0.000000e+00 : f32
    %10 = vector.broadcast %cst_5 : f32 to vector<8x512xf32>
    %11 = arith.maximumf %6, %10 : vector<8x512xf32>
    %cst_6 = arith.constant 0.000000e+00 : f32
    %12 = vector.broadcast %cst_6 : f32 to vector<8x512xf32>
    %13 = arith.maximumf %9, %12 : vector<8x512xf32>
    %14 = arith.maximumf %11, %13 : vector<8x512xf32>
    %c0_7 = arith.constant 0 : index
    %c0_8 = arith.constant 0 : index
    %15 = vector.load %arg4[%c0_7, %c0_8] : memref<512x128xf32, #tpu.memory_space<vmem>>, vector<512x128xf32>
    %cst_9 = arith.constant dense<0.000000e+00> : vector<8x128xf32>
    %16 = tpu.matmul %14, %15, %cst_9 {dimension_numbers = #tpu.dot_dimension_numbers<[1], [0], [0], [1], [0, 0, 1, 1], [], []>} : vector<8x512xf32>, vector<512x128xf32>, vector<8x128xf32> -> vector<8x128xf32>
    %c0_10 = arith.constant 0 : index
    %c0_11 = arith.constant 0 : index
    %17 = vector.load %arg5[%c0_10, %c0_11] : memref<1x128xf32, #tpu.memory_space<vmem>>, vector<1x128xf32>
    %18 = vector.broadcast %17 : vector<1x128xf32> to vector<8x128xf32>
    %19 = arith.addf %16, %18 : vector<8x128xf32>
    %cst_12 = arith.constant 0.000000e+00 : f32
    %20 = vector.broadcast %cst_12 : f32 to vector<8x128xf32>
    %21 = arith.maximumf %19, %20 : vector<8x128xf32>
    %c0_13 = arith.constant 0 : index
    %c0_14 = arith.constant 0 : index
    %22 = vector.load %arg6[%c0_13, %c0_14] : memref<128x128xf32, #tpu.memory_space<vmem>>, vector<128x128xf32>
    %cst_15 = arith.constant dense<0.000000e+00> : vector<8x128xf32>
    %23 = tpu.matmul %21, %22, %cst_15 {dimension_numbers = #tpu.dot_dimension_numbers<[1], [0], [0], [1], [0, 0, 1, 1], [], []>} : vector<8x128xf32>, vector<128x128xf32>, vector<8x128xf32> -> vector<8x128xf32>
    %c0_16 = arith.constant 0 : index
    %c0_17 = arith.constant 0 : index
    %24 = vector.load %arg7[%c0_16, %c0_17] : memref<1x128xf32, #tpu.memory_space<vmem>>, vector<1x128xf32>
    %25 = vector.broadcast %24 : vector<1x128xf32> to vector<8x128xf32>
    %26 = arith.addf %23, %25 : vector<8x128xf32>
    %c0_18 = arith.constant 0 : index
    %c0_19 = arith.constant 0 : index
    %27 = vector.load %arg8[%c0_18, %c0_19] : memref<8x128xf32, #tpu.memory_space<vmem>>, vector<8x128xf32>
    tpu.vector_store %arg8[%c0_18, %c0_19], %26 {strides = array<i32>} : memref<8x128xf32, #tpu.memory_space<vmem>>, vector<8x128xf32>,
    return
  }
  func.func @transform_0(%arg0: i32) -> (i32, i32) {
    %c0_i32 = arith.constant 0 : i32
    %c0_i32_0 = arith.constant 0 : i32
    return %arg0, %c0_i32 : i32, i32
  }
  func.func @transform_1(%arg0: i32) -> (i32, i32) {
    %c0_i32 = arith.constant 0 : i32
    %c0_i32_0 = arith.constant 0 : i32
    %c0_i32_1 = arith.constant 0 : i32
    return %c0_i32, %c0_i32_0 : i32, i32
  }
  func.func @transform_2(%arg0: i32) -> (i32, i32) {
    %c0_i32 = arith.constant 0 : i32
    %c0_i32_0 = arith.constant 0 : i32
    %c0_i32_1 = arith.constant 0 : i32
    return %c0_i32, %c0_i32_0 : i32, i32
  }
  func.func @transform_3(%arg0: i32) -> (i32, i32) {
    %c0_i32 = arith.constant 0 : i32
    %c0_i32_0 = arith.constant 0 : i32
    %c0_i32_1 = arith.constant 0 : i32
    return %c0_i32, %c0_i32_0 : i32, i32
  }
  func.func @transform_4(%arg0: i32) -> (i32, i32) {
    %c0_i32 = arith.constant 0 : i32
    %c0_i32_0 = arith.constant 0 : i32
    %c0_i32_1 = arith.constant 0 : i32
    return %c0_i32, %c0_i32_0 : i32, i32
  }
  func.func @transform_5(%arg0: i32) -> (i32, i32) {
    %c0_i32 = arith.constant 0 : i32
    %c0_i32_0 = arith.constant 0 : i32
    %c0_i32_1 = arith.constant 0 : i32
    return %c0_i32, %c0_i32_0 : i32, i32
  }
  func.func @transform_6(%arg0: i32) -> (i32, i32) {
    %c0_i32 = arith.constant 0 : i32
    %c0_i32_0 = arith.constant 0 : i32
    %c0_i32_1 = arith.constant 0 : i32
    return %c0_i32, %c0_i32_0 : i32, i32
  }
  func.func @transform_7(%arg0: i32) -> (i32, i32) {
    %c0_i32 = arith.constant 0 : i32
    %c0_i32_0 = arith.constant 0 : i32
    return %arg0, %c0_i32 : i32, i32
  }
}

</mosaic_0001>

<bundles_post_ra>
// kernel: tile.8
= control target key start
LH: loop header
LB: loop body
LE: loop exit
PB: predicated region body
PF: predicated region fallthrough
CT: control target
= control target key end

     0   :  { %s22_s0 = inlined_call_operand.vmem [shape: f32[64], index: 0, kind: input, shape index: {}]   ;;  %s23_s1 = inlined_call_operand.vmem [shape: f32[7,64], index: 1, kind: output, shape index: {}]  }
   0x1   :  { %v4_v0 = vld [vmem:[%s22_s0] ss:$0 sm:$0xff] }
   0x2   :  { %5 = vst [vmem:[%s23_s1] sm:$0xff] %v4_v0 }

// kernel: tile.9
= control target key start
LH: loop header
LB: loop body
LE: loop exit
PB: predicated region body
PF: predicated region fallthrough
CT: control target
= control target key end

     0   :  { %vm3_vm0 = vcmask 523264   ;;  %s21_s8 = smov 64   ;;  %vm9_vm1 = vcmask 1048064   ;;  %s41_s0 = inlined_call_operand.vmem [shape: f32[7,64], index: 0, kind: input, shape index: {}]   ;;  %s42_s1 = inlined_call_operand.vmem [shape: f32[448], index: 1, kind: output, shape index: {}]  }
   0x1   :  { %v19_v0 = vld [vmem:[%s41_s0 + $0x1] ss:$2 sm:$0x7]   ;;  %v2_v1 = vld [vmem:[%s41_s0] ss:$2 sm:$0xf]  }
   0x2   :  { %7 = vrot.lane.b32.xlu0 %v19_v0, %s21_s8  ;;  %4 = vst.msk [vmem:[#allocation0] sm:$0xf] %vm3_vm0, %v2_v1  }
  0x74   :  { %v8_v2 = vpop.permute.xlu0 %7  }
  0x75   :  { %10 = vst.msk [vmem:[#allocation0] sm:$0x7] %vm9_vm1, %v8_v2  }
  0x7c   :  { %v15_v3 = vld [vmem:[#allocation0] sm:$0xf] }
  0x7d   :  { %18 = vst [vmem:[%s42_s1] sm:$0xf] %v15_v3 }

// kernel: convnet1d_forward.1
= control target key start
LH: loop header
LB: loop body
LE: loop exit
PB: predicated region body
PF: predicated region fallthrough
CT: control target
= control target key end

     0   :  { %v845_v3 = vmov 0.0   ;;  %vm75_vm0 = vcmask 392192   ;;  %vm846_vm1 = vmmov 0   ;;  %s1317_s1 = inlined_call_operand.vmem [shape: f32[48,1024], index: 1, kind: input, shape index: {}]   ;;  %s1318_s0 = inlined_call_operand.vmem [shape: f32[8,48], index: 0, kind: input, shape index: {}]   ;;  %s1319_s3 = inlined_call_operand.vmem [shape: f32[512,128], index: 3, kind: input, shape index: {}]   ;;  %s1320_s2 = inlined_call_operand.vmem [shape: f32[1,512], index: 2, kind: input, shape index: {}]   ;;  %s1321_s5 = inlined_call_operand.vmem [shape: f32[128,128], index: 5, kind: input, shape index: {}]   ;;  %s1322_s4 = inlined_call_operand.vmem [shape: f32[1,128], index: 4, kind: input, shape index: {}]   ;;  %s1323_s6 = inlined_call_operand.vmem [shape: f32[1,128], index: 6, kind: input, shape index: {}]   ;;  %s1324_s7 = inlined_call_operand.vmem [shape: f32[8,128], index: 7, kind: output, shape index: {}]  }
   0x1   :  { %v68_v0 = vld [vmem:[%s1317_s1 + $0x148] sm:$0xff]  ;;  %v67_v2 = vld [vmem:[%s1317_s1 + $0x140] sm:$0xff]  ;;  %143 = vmatprep.mubr.f32.mxu1 %v845_v3  ;;  %285 = vmatprep.mubr.f32.mxu0 %v845_v3  ;;  %v70_v26 = vld [vmem:[%s1317_s1 + $0x158] sm:$0xff] }
   0x2   :  { %v72_v1 = vld [vmem:[%s1317_s1 + $0x168] sm:$0xff]  ;;  %99 = vmatprep.subr.mxu1 %v68_v0  ;;  %v71_v4 = vld [vmem:[%s1317_s1 + $0x160] sm:$0xff]  ;;  %v69_v27 = vld [vmem:[%s1317_s1 + $0x150] sm:$0xff] }
   0x3   :  { %241 = vmatprep.subr.mxu0 %v72_v1  ;;  %v60_v5 = vld [vmem:[%s1317_s1 + $0x108] sm:$0xff]  ;;  %100 = vmatpush1.msra.mxu1 %v67_v2  ;;  %v59_v7 = vld [vmem:[%s1317_s1 + $0x100] sm:$0xff]  ;;  %v62_v28 = vld [vmem:[%s1317_s1 + $0x118] sm:$0xff] }
   0x4   :  { %v64_v6 = vld [vmem:[%s1317_s1 + $0x128] sm:$0xff]  ;;  %242 = vmatpush1.msra.mxu0 %v71_v4  ;;  %v63_v8 = vld [vmem:[%s1317_s1 + $0x120] sm:$0xff]  ;;  %101 = vmatprep.subr.mxu1 %v60_v5  ;;  %v61_v29 = vld [vmem:[%s1317_s1 + $0x110] sm:$0xff] }
   0x5   :  { %v52_v9 = vld [vmem:[%s1317_s1 + $0xc8] sm:$0xff]  ;;  %243 = vmatprep.subr.mxu0 %v64_v6  ;;  %v51_v11 = vld [vmem:[%s1317_s1 + $0xc0] sm:$0xff]  ;;  %102 = vmatpush1.msra.mxu1 %v59_v7  ;;  %v54_v30 = vld [vmem:[%s1317_s1 + $0xd8] sm:$0xff] }
   0x6   :  { %v56_v10 = vld [vmem:[%s1317_s1 + $0xe8] sm:$0xff]  ;;  %v55_v12 = vld [vmem:[%s1317_s1 + $0xe0] sm:$0xff]  ;;  %244 = vmatpush1.msra.mxu0 %v63_v8  ;;  %103 = vmatprep.subr.mxu1 %v52_v9  ;;  %v53_v31 = vld [vmem:[%s1317_s1 + $0xd0] sm:$0xff] }
   0x7   :  { %v44_v13 = vld [vmem:[%s1317_s1 + $0x88] sm:$0xff]  ;;  %245 = vmatprep.subr.mxu0 %v56_v10  ;;  %v43_v15 = vld [vmem:[%s1317_s1 + $0x80] sm:$0xff]  ;;  %104 = vmatpush1.msra.mxu1 %v51_v11  ;;  %v46_v32 = vld [vmem:[%s1317_s1 + $0x98] sm:$0xff] }
   0x8   :  { %v48_v14 = vld [vmem:[%s1317_s1 + $0xa8] sm:$0xff]  ;;  %v47_v16 = vld [vmem:[%s1317_s1 + $0xa0] sm:$0xff]  ;;  %246 = vmatpush1.msra.mxu0 %v55_v12  ;;  %105 = vmatprep.subr.mxu1 %v44_v13  ;;  %v436_v33 = vld [vmem:[%s1319_s3 + $0xf8] sm:$0xff] }
   0x9   :  { %v36_v17 = vld [vmem:[%s1317_s1 + $0x48] sm:$0xff]  ;;  %247 = vmatprep.subr.mxu0 %v48_v14  ;;  %v35_v19 = vld [vmem:[%s1317_s1 + $0x40] sm:$0xff]  ;;  %106 = vmatpush1.msra.mxu1 %v43_v15  ;;  %v420_v34 = vld [vmem:[%s1319_s3 + $0x78] sm:$0xff] }
   0xa   :  { %v40_v18 = vld [vmem:[%s1317_s1 + $0x68] sm:$0xff]  ;;  %v39_v20 = vld [vmem:[%s1317_s1 + $0x60] sm:$0xff]  ;;  %248 = vmatpush1.msra.mxu0 %v47_v16  ;;  %107 = vmatprep.subr.mxu1 %v36_v17  ;;  %v45_v35 = vld [vmem:[%s1317_s1 + $0x90] sm:$0xff] }
   0xb   :  { %v28_v21 = vld [vmem:[%s1317_s1 + $0x8] sm:$0xff]  ;;  %249 = vmatprep.subr.mxu0 %v40_v18  ;;  %v27_v23 = vld [vmem:[%s1317_s1] sm:$0xff]  ;;  %108 = vmatpush1.msra.mxu1 %v35_v19  ;;  %v435_v36 = vld [vmem:[%s1319_s3 + $0xf0] sm:$0xff] }
   0xc   :  { %v32_v22 = vld [vmem:[%s1317_s1 + $0x28] sm:$0xff]  ;;  %v31_v24 = vld [vmem:[%s1317_s1 + $0x20] sm:$0xff]  ;;  %250 = vmatpush1.msra.mxu0 %v39_v20  ;;  %109 = vmatprep.subr.mxu1 %v28_v21  ;;  %v419_v37 = vld [vmem:[%s1319_s3 + $0x70] sm:$0xff] }
   0xd   :  { %v964_v25 = vld [vmem:[%s1318_s0] sm:$0xff]  ;;  %251 = vmatprep.subr.mxu0 %v32_v22  ;;  %110 = vmatpush1.msra.mxu1 %v27_v23  ;;  %v38_v38 = vld [vmem:[%s1317_s1 + $0x58] sm:$0xff]  ;;  %v434_v39 = vld [vmem:[%s1319_s3 + $0xe8] sm:$0xff] }
   0xe   :  { %252 = vmatpush1.msra.mxu0 %v31_v24  ;;  %715 = vmatmul.mubr.msk.f32.vlgmr.msra.gmra.mxu1 %vm75_vm0, %v964_v25  ;;  %v37_v40 = vld [vmem:[%s1317_s1 + $0x50] sm:$0xff]  ;;  %v418_v41 = vld [vmem:[%s1319_s3 + $0x68] sm:$0xff]  ;;  %v30_v42 = vld [vmem:[%s1317_s1 + $0x18] sm:$0xff] }
   0xf   :  { %170 = vmatprep.subr.mxu1 %v70_v26  ;;  %717 = vmatmul.mubr.msk.f32.vlgmr.msra.gmra.mxu0 %vm75_vm0, %v964_v25  ;;  %v433_v43 = vld [vmem:[%s1319_s3 + $0xe0] sm:$0xff]  ;;  %v29_v44 = vld [vmem:[%s1317_s1 + $0x10] sm:$0xff]  ;;  %v74_v46 = vld [vmem:[%s1317_s1 + $0x178] sm:$0xff] }
  0x10   :  { %171 = vmatpush1.msra.mxu1 %v69_v27  ;;  %214 = vmatprep.mubr.f32.mxu1 %v845_v3  ;;  %v417_v45 = vld [vmem:[%s1319_s3 + $0x60] sm:$0xff]  ;;  %v73_v47 = vld [vmem:[%s1317_s1 + $0x170] sm:$0xff]  ;;  %v66_v48 = vld [vmem:[%s1317_s1 + $0x138] sm:$0xff] }
  0x11   :  { %172 = vmatprep.subr.mxu1 %v62_v28  ;;  %721 = vmatprep.subr.mxu0 %v436_v33  ;;  %v432_v49 = vld [vmem:[%s1319_s3 + $0xd8] sm:$0xff]  ;;  %v65_v50 = vld [vmem:[%s1317_s1 + $0x130] sm:$0xff]  ;;  %v430_v57 = vld [vmem:[%s1319_s3 + $0xc8] sm:$0xff] }
  0x12   :  { %173 = vmatpush1.msra.mxu1 %v61_v29  ;;  %722 = vmatpush3.msra.mxu0 %v420_v34  ;;  %v416_v51 = vld [vmem:[%s1319_s3 + $0x58] sm:$0xff]  ;;  %v431_v53 = vld [vmem:[%s1319_s3 + $0xd0] sm:$0xff]  ;;  %v414_v59 = vld [vmem:[%s1319_s3 + $0x48] sm:$0xff] }
  0x13   :  { %174 = vmatprep.subr.mxu1 %v54_v30  ;;  %723 = vmatprep.subr.mxu0 %v435_v36  ;;  %v58_v52 = vld [vmem:[%s1317_s1 + $0xf8] sm:$0xff]  ;;  %v57_v54 = vld [vmem:[%s1317_s1 + $0xf0] sm:$0xff]  ;;  %v429_v61 = vld [vmem:[%s1319_s3 + $0xc0] sm:$0xff] }
  0x14   :  { %175 = vmatpush1.msra.mxu1 %v53_v31  ;;  %724 = vmatpush3.msra.mxu0 %v419_v37  ;;  %v415_v55 = vld [vmem:[%s1319_s3 + $0x50] sm:$0xff]  ;;  %v50_v56 = vld [vmem:[%s1317_s1 + $0xb8] sm:$0xff]  ;;  %v413_v63 = vld [vmem:[%s1319_s3 + $0x40] sm:$0xff] }
  0x15   :  { %176 = vmatprep.subr.mxu1 %v46_v32  ;;  %725 = vmatprep.subr.mxu0 %v434_v39  ;;  %v49_v58 = vld [vmem:[%s1317_s1 + $0xb0] sm:$0xff]  ;;  %v42_v60 = vld [vmem:[%s1317_s1 + $0x78] sm:$0xff]  ;;  %v426_v7 = vld [vmem:[%s1319_s3 + $0xa8] sm:$0xff] }
  0x16   :  { %177 = vmatpush1.msra.mxu1 %v45_v35  ;;  %726 = vmatpush3.msra.mxu0 %v418_v41  ;;  %v41_v62 = vld [vmem:[%s1317_s1 + $0x70] sm:$0xff]  ;;  %v34_v0 = vld [vmem:[%s1317_s1 + $0x38] sm:$0xff]  ;;  %v410_v8 = vld [vmem:[%s1319_s3 + $0x28] sm:$0xff] }
  0x17   :  { %178 = vmatprep.subr.mxu1 %v38_v38  ;;  %727 = vmatprep.subr.mxu0 %v433_v43  ;;  %v428_v1 = vld [vmem:[%s1319_s3 + $0xb8] sm:$0xff]  ;;  %v33_v2 = vld [vmem:[%s1317_s1 + $0x30] sm:$0xff]  ;;  %v425_v9 = vld [vmem:[%s1319_s3 + $0xa0] sm:$0xff] }
  0x18   :  { %179 = vmatpush1.msra.mxu1 %v37_v40  ;;  %728 = vmatpush3.msra.mxu0 %v417_v45  ;;  %v412_v4 = vld [vmem:[%s1319_s3 + $0x38] sm:$0xff]  ;;  %v427_v5 = vld [vmem:[%s1319_s3 + $0xb0] sm:$0xff]  ;;  %v409_v10 = vld [vmem:[%s1319_s3 + $0x20] sm:$0xff] }
  0x19   :  { %180 = vmatprep.subr.mxu1 %v30_v42  ;;  %729 = vmatprep.subr.mxu0 %v432_v49  ;;  %v411_v6 = vld [vmem:[%s1319_s3 + $0x30] sm:$0xff]  ;;  %v424_v11 = vld [vmem:[%s1319_s3 + $0x98] sm:$0xff]  ;;  %v422_v19 = vld [vmem:[%s1319_s3 + $0x88] sm:$0xff] }
  0x1a   :  { %181 = vmatpush1.msra.mxu1 %v29_v44  ;;  %730 = vmatpush3.msra.mxu0 %v416_v51  ;;  %v468_v12 = vld [vmem:[%s1319_s3 + $0x1f8] sm:$0xff]  ;;  %v423_v15 = vld [vmem:[%s1319_s3 + $0x90] sm:$0xff]  ;;  %v466_v20 = vld [vmem:[%s1319_s3 + $0x1e8] sm:$0xff]  ;;  %v365_v51 = vlaneseq }
  0x1b   :  { %716 = vmatmul.mubr.msk.f32.vlgmr.msra.gmra.mxu1 %vm75_vm0, %v964_v25  ;;  %312 = vmatprep.subr.mxu1 %v74_v46  ;;  %v408_v13 = vld [vmem:[%s1319_s3 + $0x18] sm:$0xff]  ;;  %v467_v16 = vld [vmem:[%s1319_s3 + $0x1f0] sm:$0xff]  ;;  %v406_v21 = vld [vmem:[%s1319_s3 + $0x8] sm:$0xff] }
  0x1c   :  { %313 = vmatpush1.msra.mxu1 %v73_v47  ;;  %356 = vmatprep.mubr.f32.mxu1 %v845_v3  ;;  %v452_v14 = vld [vmem:[%s1319_s3 + $0x178] sm:$0xff]  ;;  %v407_v17 = vld [vmem:[%s1319_s3 + $0x10] sm:$0xff]  ;;  %v450_v22 = vld [vmem:[%s1319_s3 + $0x168] sm:$0xff] }
  0x1d   :  { %314 = vmatprep.subr.mxu1 %v66_v48  ;;  %731 = vmatprep.subr.mxu0 %v431_v53  ;;  %v451_v18 = vld [vmem:[%s1319_s3 + $0x170] sm:$0xff]  ;;  %v421_v23 = vld [vmem:[%s1319_s3 + $0x80] sm:$0xff]  ;;  %v464_v27 = vld [vmem:[%s1319_s3 + $0x1d8] sm:$0xff] }
  0x1e   :  { %315 = vmatpush1.msra.mxu1 %v65_v50  ;;  %732 = vmatpush3.msra.mxu0 %v415_v55  ;;  %v465_v24 = vld [vmem:[%s1319_s3 + $0x1e0] sm:$0xff]  ;;  %v448_v28 = vld [vmem:[%s1319_s3 + $0x158] sm:$0xff]  ;;  %v463_v29 = vld [vmem:[%s1319_s3 + $0x1d0] sm:$0xff] }
  0x1f   :  { %316 = vmatprep.subr.mxu1 %v58_v52  ;;  %733 = vmatprep.subr.mxu0 %v430_v57  ;;  %v449_v26 = vld [vmem:[%s1319_s3 + $0x160] sm:$0xff]  ;;  %v447_v30 = vld [vmem:[%s1319_s3 + $0x150] sm:$0xff]  ;;  %v462_v31 = vld [vmem:[%s1319_s3 + $0x1c8] sm:$0xff]  ;;  %v366_v52 = vshrl.u32 %v365_v51, 7 }
  0x20   :  { %317 = vmatpush1.msra.mxu1 %v57_v54  ;;  %734 = vmatpush3.msra.mxu0 %v414_v59  ;;  %v446_v32 = vld [vmem:[%s1319_s3 + $0x148] sm:$0xff]  ;;  %v461_v33 = vld [vmem:[%s1319_s3 + $0x1c0] sm:$0xff]  ;;  %v460_v35 = vld [vmem:[%s1319_s3 + $0x1b8] sm:$0xff] }
  0x21   :  { %318 = vmatprep.subr.mxu1 %v50_v56  ;;  %735 = vmatprep.subr.mxu0 %v429_v61  ;;  %v445_v34 = vld [vmem:[%s1319_s3 + $0x140] sm:$0xff]  ;;  %v444_v36 = vld [vmem:[%s1319_s3 + $0x138] sm:$0xff]  ;;  %v459_v37 = vld [vmem:[%s1319_s3 + $0x1b0] sm:$0xff]  ;;  %v367_v53 = vsub.s32 0, %v366_v52  ;;  %v371_v55 = vsub.s32 1, %v366_v52 }
  0x22   :  { %319 = vmatpush1.msra.mxu1 %v49_v58  ;;  %736 = vmatpush3.msra.mxu0 %v413_v63  ;;  %v443_v38 = vld [vmem:[%s1319_s3 + $0x130] sm:$0xff]  ;;  %v458_v39 = vld [vmem:[%s1319_s3 + $0x1a8] sm:$0xff]  ;;  %v457_v41 = vld [vmem:[%s1319_s3 + $0x1a0] sm:$0xff] }
  0x23   :  { %320 = vmatprep.subr.mxu1 %v42_v60  ;;  %737 = vmatprep.subr.mxu0 %v428_v1  ;;  %v442_v40 = vld [vmem:[%s1319_s3 + $0x128] sm:$0xff]  ;;  %v441_v42 = vld [vmem:[%s1319_s3 + $0x120] sm:$0xff]  ;;  %v456_v43 = vld [vmem:[%s1319_s3 + $0x198] sm:$0xff] }
  0x24   :  { %321 = vmatpush1.msra.mxu1 %v41_v62  ;;  %738 = vmatpush3.msra.mxu0 %v412_v4  ;;  %v440_v44 = vld [vmem:[%s1319_s3 + $0x118] sm:$0xff]  ;;  %v455_v45 = vld [vmem:[%s1319_s3 + $0x190] sm:$0xff]  ;;  %v454_v47 = vld [vmem:[%s1319_s3 + $0x188] sm:$0xff] }
  0x25   :  { %322 = vmatprep.subr.mxu1 %v34_v0  ;;  %739 = vmatprep.subr.mxu0 %v427_v5  ;;  %v439_v46 = vld [vmem:[%s1319_s3 + $0x110] sm:$0xff]  ;;  %v438_v48 = vld [vmem:[%s1319_s3 + $0x108] sm:$0xff]  ;;  %v453_v49 = vld [vmem:[%s1319_s3 + $0x180] sm:$0xff] }
  0x26   :  { %323 = vmatpush1.msra.mxu1 %v33_v2  ;;  %740 = vmatpush3.msra.mxu0 %v411_v6  ;;  %v437_v50 = vld [vmem:[%s1319_s3 + $0x100] sm:$0xff] }
  0x27   :  { %718 = vmatmul.mubr.msk.f32.vlgmr.msra.gmra.mxu1 %vm75_vm0, %v964_v25  ;;  %741 = vmatprep.subr.mxu0 %v426_v7  ;;  %v405_v25 = vld [vmem:[%s1319_s3] sm:$0xff] }
  0x28   :  { %742 = vmatpush3.msra.mxu0 %v410_v8  ;;  %756 = vmatprep.subr.mxu1 %v468_v12  ;;  %v363_v54 = vld [vmem:[%s1320_s2] sm:$0xf] }
  0x29   :  { %743 = vmatprep.subr.mxu0 %v425_v9  ;;  %757 = vmatpush3.msra.mxu1 %v452_v14  ;;  %v368_v56 = vrot.slane %v363_v54, %v367_v53  ;;  %v372_v57 = vrot.slane %v363_v54, %v371_v55  ;;  %v379_v9 = vsub.s32 3, %v366_v52  ;;  %v720_v53 = vld [vmem:[%s1323_s6] ss:$0 sm:$0xff] }
  0x2a   :  { %744 = vmatpush3.msra.mxu0 %v409_v10  ;;  %758 = vmatprep.subr.mxu1 %v467_v16 }
  0x2b   :  { %745 = vmatprep.subr.mxu0 %v424_v11  ;;  %759 = vmatpush3.msra.mxu1 %v451_v18  ;;  %v375_v11 = vsub.s32 2, %v366_v52  ;;  %v380_v12 = vrot.slane %v363_v54, %v379_v9 }
  0x2c   :  { %746 = vmatpush3.msra.mxu0 %v408_v13  ;;  %760 = vmatprep.subr.mxu1 %v466_v20 }
  0x2d   :  { %747 = vmatprep.subr.mxu0 %v423_v15  ;;  %761 = vmatpush3.msra.mxu1 %v450_v22  ;;  %v376_v13 = vrot.slane %v363_v54, %v375_v11 }
  0x2e   :  { %748 = vmatpush3.msra.mxu0 %v407_v17  ;;  %762 = vmatprep.subr.mxu1 %v465_v24 }
  0x2f   :  { %749 = vmatprep.subr.mxu0 %v422_v19  ;;  %763 = vmatpush3.msra.mxu1 %v449_v26 }
  0x30   :  { %750 = vmatpush3.msra.mxu0 %v406_v21  ;;  %764 = vmatprep.subr.mxu1 %v464_v27  ;;  %v632_v27 = vld [vmem:[%s1321_s5 + $0x78] sm:$0xff] }
  0x31   :  { %751 = vmatprep.subr.mxu0 %v421_v23  ;;  %765 = vmatpush3.msra.mxu1 %v448_v28  ;;  %v631_v28 = vld [vmem:[%s1321_s5 + $0x70] sm:$0xff] }
  0x32   :  { %752 = vmatpush3.msra.mxu0 %v405_v25  ;;  %766 = vmatprep.subr.mxu1 %v463_v29  ;;  %v630_v29 = vld [vmem:[%s1321_s5 + $0x68] sm:$0xff] }
  0x33   :  { %808 = vmatprep.subr.mxu0 %v845_v3  ;;  %767 = vmatpush3.msra.mxu1 %v447_v30  ;;  %v629_v30 = vld [vmem:[%s1321_s5 + $0x60] sm:$0xff] }
  0x34   :  { %768 = vmatprep.subr.mxu1 %v462_v31  ;;  %v628_v31 = vld [vmem:[%s1321_s5 + $0x58] sm:$0xff] }
  0x35   :  { %769 = vmatpush3.msra.mxu1 %v446_v32  ;;  %v627_v32 = vld [vmem:[%s1321_s5 + $0x50] sm:$0xff] }
  0x36   :  { %770 = vmatprep.subr.mxu1 %v461_v33  ;;  %v626_v33 = vld [vmem:[%s1321_s5 + $0x48] sm:$0xff] }
  0x37   :  { %771 = vmatpush3.msra.mxu1 %v445_v34  ;;  %v625_v34 = vld [vmem:[%s1321_s5 + $0x40] sm:$0xff] }
  0x38   :  { %772 = vmatprep.subr.mxu1 %v460_v35  ;;  %v624_v35 = vld [vmem:[%s1321_s5 + $0x38] sm:$0xff] }
  0x39   :  { %773 = vmatpush3.msra.mxu1 %v444_v36  ;;  %v623_v36 = vld [vmem:[%s1321_s5 + $0x30] sm:$0xff] }
  0x3a   :  { %774 = vmatprep.subr.mxu1 %v459_v37  ;;  %v622_v37 = vld [vmem:[%s1321_s5 + $0x28] sm:$0xff] }
  0x3b   :  { %775 = vmatpush3.msra.mxu1 %v443_v38  ;;  %v621_v38 = vld [vmem:[%s1321_s5 + $0x20] sm:$0xff] }
  0x3c   :  { %776 = vmatprep.subr.mxu1 %v458_v39  ;;  %v620_v39 = vld [vmem:[%s1321_s5 + $0x18] sm:$0xff] }
  0x3d   :  { %777 = vmatpush3.msra.mxu1 %v442_v40  ;;  %v619_v40 = vld [vmem:[%s1321_s5 + $0x10] sm:$0xff] }
  0x3e   :  { %778 = vmatprep.subr.mxu1 %v457_v41  ;;  %v618_v41 = vld [vmem:[%s1321_s5 + $0x8] sm:$0xff] }
  0x3f   :  { %779 = vmatpush3.msra.mxu1 %v441_v42  ;;  %v617_v42 = vld [vmem:[%s1321_s5] sm:$0xff] }
  0x40   :  { %780 = vmatprep.subr.mxu1 %v456_v43 }
  0x41   :  { %781 = vmatpush3.msra.mxu1 %v440_v44 }
  0x42   :  { %782 = vmatprep.subr.mxu1 %v455_v45 }
  0x43   :  { %783 = vmatpush3.msra.mxu1 %v439_v46  ;;  %v719_v46 = vld [vmem:[%s1322_s4] ss:$0 sm:$0xff] }
  0x44   :  { %784 = vmatprep.subr.mxu1 %v454_v47 }
  0x45   :  { %785 = vmatpush3.msra.mxu1 %v438_v48 }
  0x46   :  { %786 = vmatprep.subr.mxu1 %v453_v49 }
  0x47   :  { %787 = vmatpush3.msra.mxu1 %v437_v50 }
  0xce   :  { %v145_v58 = vpop.f32.mrf.mxu1 }
  0xcf   :  { %v385_v59 = vadd.f32 %v368_v56, %v145_v58  ;;  %v287_v60 = vpop.f32.mrf.mxu0 }
  0xd0   :  { %v389_v61 = vadd.f32 %v368_v56, %v287_v60  ;;  %v147_v62 = vpop.f32.mrf.mxu1 }
  0xd1   :  { %v386_v63 = vadd.f32 %v372_v57, %v147_v62  ;;  %v289_v0 = vpop.f32.mrf.mxu0  ;;  %v393_v2 = vmax.f32 %v385_v59, 0.0 }
  0xd2   :  { %v390_v1 = vadd.f32 %v372_v57, %v289_v0  ;;  %v397_v4 = vmax.f32 %v389_v61, 0.0 }
  0xd3   :  { %v394_v5 = vmax.f32 %v386_v63, 0.0 }
  0xd4   :  { %v398_v6 = vmax.f32 %v390_v1, 0.0  ;;  %v401_v8 = vmax.f32 %v393_v2, %v397_v4 }
  0xd6   :  { %v402_v7 = vmax.f32 %v394_v5, %v398_v6 }
  0xd8   :  { %540 = vmatprep.mubr.f32.mxu0 %v402_v7 }
  0xd9   :  { %541 = vmatmul.mubr.f32.vlgmr.msra.gmra.mxu0 %v401_v8 }
  0xda   :  { %809 = vmatpush3.msra.mxu0 %v632_v27  ;;  %840 = vmatprep.mubr.msk.f32.mxu0 %vm846_vm1, %v845_v3 }
  0xdb   :  { %v216_v10 = vpop.f32.mrf.mxu1  ;;  %810 = vmatprep.subr.mxu0 %v845_v3 }
  0xdc   :  { %v387_v18 = vadd.f32 %v376_v13, %v216_v10  ;;  %811 = vmatpush3.msra.mxu0 %v631_v28 }
  0xdd   :  { %v218_v14 = vpop.f32.mrf.mxu1  ;;  %812 = vmatprep.subr.mxu0 %v845_v3 }
  0xde   :  { %v388_v16 = vadd.f32 %v380_v12, %v218_v14  ;;  %v395_v24 = vmax.f32 %v387_v18, 0.0  ;;  %813 = vmatpush3.msra.mxu0 %v630_v29 }
  0xdf   :  { %814 = vmatprep.subr.mxu0 %v845_v3 }
  0xe0   :  { %v396_v22 = vmax.f32 %v388_v16, 0.0  ;;  %815 = vmatpush3.msra.mxu0 %v629_v30 }
  0xe1   :  { %816 = vmatprep.subr.mxu0 %v845_v3 }
  0xe2   :  { %817 = vmatpush3.msra.mxu0 %v628_v31 }
  0xe3   :  { %818 = vmatprep.subr.mxu0 %v845_v3 }
  0xe4   :  { %819 = vmatpush3.msra.mxu0 %v627_v32 }
  0xe5   :  { %820 = vmatprep.subr.mxu0 %v845_v3 }
  0xe6   :  { %821 = vmatpush3.msra.mxu0 %v626_v33 }
  0xe7   :  { %v358_v15 = vpop.f32.mrf.mxu1  ;;  %822 = vmatprep.subr.mxu0 %v845_v3 }
  0xe8   :  { %v391_v17 = vadd.f32 %v376_v13, %v358_v15  ;;  %823 = vmatpush3.msra.mxu0 %v625_v34 }
  0xe9   :  { %v360_v19 = vpop.f32.mrf.mxu1  ;;  %824 = vmatprep.subr.mxu0 %v845_v3 }
  0xea   :  { %v392_v20 = vadd.f32 %v380_v12, %v360_v19  ;;  %v399_v21 = vmax.f32 %v391_v17, 0.0  ;;  %825 = vmatpush3.msra.mxu0 %v624_v35 }
  0xeb   :  { %826 = vmatprep.subr.mxu0 %v845_v3 }
  0xec   :  { %v400_v23 = vmax.f32 %v392_v20, 0.0  ;;  %v403_v26 = vmax.f32 %v395_v24, %v399_v21  ;;  %827 = vmatpush3.msra.mxu0 %v623_v36 }
  0xed   :  { %828 = vmatprep.subr.mxu0 %v845_v3 }
  0xee   :  { %v404_v25 = vmax.f32 %v396_v22, %v400_v23  ;;  %829 = vmatpush3.msra.mxu0 %v622_v37 }
  0xef   :  { %830 = vmatprep.subr.mxu0 %v845_v3 }
  0xf0   :  { %610 = vmatprep.mubr.f32.mxu1 %v404_v25  ;;  %831 = vmatpush3.msra.mxu0 %v621_v38 }
  0xf1   :  { %611 = vmatmul.mubr.f32.vlgmr.msra.gmra.mxu1 %v403_v26  ;;  %832 = vmatprep.subr.mxu0 %v845_v3 }
  0xf2   :  { %833 = vmatpush3.msra.mxu0 %v620_v39 }
  0xf3   :  { %834 = vmatprep.subr.mxu0 %v845_v3 }
  0xf4   :  { %835 = vmatpush3.msra.mxu0 %v619_v40 }
  0xf5   :  { %836 = vmatprep.subr.mxu0 %v845_v3 }
  0xf6   :  { %837 = vmatpush3.msra.mxu0 %v618_v41 }
  0xf7   :  { %838 = vmatprep.subr.mxu0 %v845_v3 }
  0xf8   :  { %839 = vmatpush3.msra.mxu0 %v617_v42 }
 0x199   :  { %v753_v43 = vpop.f32.mrf.mxu0 }
 0x19b   :  { %v754_v44 = vpop.f32.mrf.mxu0 }
 0x19c   :  { %v755_v45 = vadd.f32 %v754_v44, %v753_v43 }
 0x19e   :  { %v543_v49 = vadd.f32 %v755_v45, %v719_v46 }
 0x1b1   :  { %v788_v47 = vpop.f32.mrf.mxu1 }
 0x1b3   :  { %v789_v48 = vpop.f32.mrf.mxu1 }
 0x1b4   :  { %v790_v50 = vadd.f32 %v789_v48, %v788_v47 }
 0x1b6   :  { %v613_v51 = vadd.f32 %v790_v50, %v543_v49 }
 0x1b8   :  { %v616_v52 = vmax.f32 %v613_v51, 0.0 }
 0x1ba   :  { %841 = vmatmul.mubr.f32.vlgmr.msra.gmra.mxu0 %v616_v52 }
 0x27a   :  { %v706_v3 = vpop.f32.mrf.mxu0 }
 0x27b   :  { %v707_v54 = vadd.f32 %v720_v53, %v706_v3 }
 0x27c   :  { %v842_v55 = vpop.f32.mrf.mxu0 }
 0x27d   :  { %710 = vst [vmem:[%s1324_s7] sm:$0xff] %v707_v54 }

</bundles_post_ra>
